<compile_context>
chip_gen: v7x
topology: tpu7x:2x2x1
jax: 0.10.0
libtpu: 0.0.40
codegen_flags: <defaults>
</compile_context>

<pallas_src>
import functools

import jax
import jax.numpy as jnp
from jax.experimental import pallas as pl
from jax.experimental.pallas import tpu as pltpu

_MIB = 1024 * 1024


# ---------------------------------------------------------------------------
# Generation-aware VMEM budget + optional deep adjacency buffering.
# ---------------------------------------------------------------------------
def _vmem_capacity_bytes():
    try:
        return int(pltpu.get_tpu_info().vmem_capacity_bytes)
    except Exception:
        return 64 * _MIB  # conservative fallback (v7x physical VMEM)


_VMEM_CAPACITY = _vmem_capacity_bytes()
# >= 16 MiB headroom under physical capacity; v7x -> 48 MiB, v5e/v6e -> 100 MiB.
_VMEM_LIMIT_BYTES = min(max(_VMEM_CAPACITY - 16 * _MIB, 32 * _MIB), 100 * _MIB)


def _probe_deep_buffering():
    """pl.Buffered(3) on the adjacency stream only pays on the big-VMEM,
    low-HBM-bandwidth generations (v5e/v6e); probe support once so we can
    silently fall back to default double-buffering if unavailable."""
    if _VMEM_CAPACITY < 96 * _MIB:
        return False
    try:
        def _copy(x_ref, o_ref):
            o_ref[...] = x_ref[...]

        fn = pl.pallas_call(
            _copy,
            out_shape=jax.ShapeDtypeStruct((256, 128), jnp.float32),
            grid=(2,),
            in_specs=[pl.BlockSpec((128, 128), lambda i: (i, 0),
                                   pipeline_mode=pl.Buffered(3))],
            out_specs=pl.BlockSpec((128, 128), lambda i: (i, 0)),
        )
        jax.block_until_ready(fn(jnp.zeros((256, 128), jnp.float32)))
        return True
    except Exception:
        return False


_DEEP_ADJ_BUFFER = _probe_deep_buffering()


# ---------------------------------------------------------------------------
# Small helpers.
# ---------------------------------------------------------------------------
def _round_up(x, m):
    return (x + m - 1) // m * m


def _pick_tile(n, cap, min_grid=1):
    """Largest multiple-of-128 divisor of n that is <= cap, preferring choices
    that leave at least `min_grid` grid steps (even 2-TC split on v7x)."""
    best = None
    t = 128
    while t <= min(n, cap):
        if n % t == 0 and n // t >= min_grid:
            best = t
        t += 128
    if best is None:
        return _pick_tile(n, cap, 1) if min_grid > 1 else n
    return best


def _pad2(x, rows, cols):
    return jnp.pad(x, ((0, rows - x.shape[0]), (0, cols - x.shape[1])))


def _adj_spec(tm, tk, n_steps):
    """BlockSpec for the streamed A operand of a hop; 3-deep pipelining on
    v5e/v6e when the grid is long enough to benefit."""
    if _DEEP_ADJ_BUFFER and n_steps >= 8:
        return pl.BlockSpec((tm, tk), lambda i, k: (i, k),
                            pipeline_mode=pl.Buffered(3))
    return pl.BlockSpec((tm, tk), lambda i, k: (i, k))


def _b_operand_spec(b, tk, b_resident):
    kdim, f = b.shape
    if b_resident:
        # Whole matrix VMEM-resident: block index is (0, 0) for every grid
        # point so it is DMA'd exactly once per hop; sliced in-kernel.
        return pl.BlockSpec((kdim, f), lambda i, k: (0, 0))
    return pl.BlockSpec((tk, f), lambda i, k: (k, 0))


# ---------------------------------------------------------------------------
# Kernel 1: one propagation hop (or the W_gnn pre-projection).
# grid = (rows//tm, reduction//tk); bf16 in, bf16 out, f32 accumulation.
# ---------------------------------------------------------------------------
def _hop_kernel(tk, b_resident, a_ref, b_ref, out_ref, acc_ref):
    k = pl.program_id(1)

    @pl.when(k == 0)
    def _init():
        acc_ref[...] = jnp.zeros_like(acc_ref)

    if b_resident:
        b = b_ref[pl.ds(pl.multiple_of(k * tk, tk), tk), :]
    else:
        b = b_ref[...]
    acc_ref[...] += jnp.dot(a_ref[...], b, preferred_element_type=jnp.float32)

    @pl.when(k == pl.num_programs(1) - 1)
    def _finalize():
        out_ref[...] = acc_ref[...].astype(out_ref.dtype)


# ---------------------------------------------------------------------------
# Kernel 2: LAST hop fused with the MLP head — accumulate A_hat @ h, then on
# the final reduction step run (optional W_gnn) + b_gnn, ReLU, W1+b1, ReLU,
# W2+b2 entirely in VMEM (h never goes back to HBM).  Small weights / biases
# are fully VMEM-resident (block index (0, 0) for every grid point).
# ---------------------------------------------------------------------------
def _hop_head_kernel(tk, b_resident, apply_wg, *refs):
    if apply_wg:
        (a_ref, b_ref, wg_ref, bg_ref, w1_ref, b1_ref,
         w2_ref, b2_ref, out_ref, acc_ref) = refs
    else:
        (a_ref, b_ref, bg_ref, w1_ref, b1_ref,
         w2_ref, b2_ref, out_ref, acc_ref) = refs
        wg_ref = None

    k = pl.program_id(1)

    @pl.when(k == 0)
    def _init():
        acc_ref[...] = jnp.zeros_like(acc_ref)

    if b_resident:
        b = b_ref[pl.ds(pl.multiple_of(k * tk, tk), tk), :]
    else:
        b = b_ref[...]
    acc_ref[...] += jnp.dot(a_ref[...], b, preferred_element_type=jnp.float32)

    @pl.when(k == pl.num_programs(1) - 1)
    def _head():
        h = acc_ref[...]
        if apply_wg:
            h = jnp.dot(h.astype(jnp.bfloat16), wg_ref[...],
                        preferred_element_type=jnp.float32)
        h = jnp.maximum(h + bg_ref[...], 0.0)
        h = jnp.dot(h.astype(jnp.bfloat16), w1_ref[...],
                    preferred_element_type=jnp.float32) + b1_ref[...]
        h = jnp.maximum(h, 0.0)
        h = jnp.dot(h.astype(jnp.bfloat16), w2_ref[...],
                    preferred_element_type=jnp.float32) + b2_ref[...]
        out_ref[...] = h.astype(out_ref.dtype)


# ---------------------------------------------------------------------------
# pallas_call wrappers.
# ---------------------------------------------------------------------------
def _tiled_matmul(a, b, *, tm, tk, b_resident):
    """out = a @ b (bf16 in / bf16 out, f32 accumulation), row axis parallel."""
    m, kdim = a.shape
    f = b.shape[1]
    grid = (m // tm, kdim // tk)
    return pl.pallas_call(
        functools.partial(_hop_kernel, tk, b_resident),
        out_shape=jax.ShapeDtypeStruct((m, f), jnp.bfloat16),
        grid_spec=pltpu.PrefetchScalarGridSpec(
            num_scalar_prefetch=0,
            grid=grid,
            in_specs=[_adj_spec(tm, tk, grid[0] * grid[1]),
                      _b_operand_spec(b, tk, b_resident)],
            out_specs=pl.BlockSpec((tm, f), lambda i, k: (i, 0)),
            scratch_shapes=[pltpu.VMEM((tm, f), jnp.float32)],
        ),
        compiler_params=pltpu.CompilerParams(
            dimension_semantics=("parallel", "arbitrary"),
            vmem_limit_bytes=_VMEM_LIMIT_BYTES,
        ),
    )(a, b)


def _tiled_matmul_head(a, b, wg, bg, w1, b1, w2, b2, *, tm, tk,
                       b_resident, apply_wg):
    """out = head(a @ b): final hop + fused MLP head, f32 logits out."""
    m, kdim = a.shape
    f = b.shape[1]
    c_pad = w2.shape[1]
    grid = (m // tm, kdim // tk)
    full = lambda arr: pl.BlockSpec(arr.shape, lambda i, k: (0, 0))

    in_specs = [_adj_spec(tm, tk, grid[0] * grid[1]),
                _b_operand_spec(b, tk, b_resident)]
    operands = [a, b]
    if apply_wg:
        in_specs.append(full(wg))
        operands.append(wg)
    in_specs += [full(bg), full(w1), full(b1), full(w2), full(b2)]
    operands += [bg, w1, b1, w2, b2]

    return pl.pallas_call(
        functools.partial(_hop_head_kernel, tk, b_resident, apply_wg),
        out_shape=jax.ShapeDtypeStruct((m, c_pad), jnp.float32),
        grid_spec=pltpu.PrefetchScalarGridSpec(
            num_scalar_prefetch=0,
            grid=grid,
            in_specs=in_specs,
            out_specs=pl.BlockSpec((tm, c_pad), lambda i, k: (i, 0)),
            scratch_shapes=[pltpu.VMEM((tm, f), jnp.float32)],
        ),
        compiler_params=pltpu.CompilerParams(
            dimension_semantics=("parallel", "arbitrary"),
            vmem_limit_bytes=_VMEM_LIMIT_BYTES,
        ),
    )(*operands)


# ---------------------------------------------------------------------------
# Parameter preparation (call-invariant: do once, cache) + forward.
# ---------------------------------------------------------------------------
def prepare_linear_mlp_params(adj, w_gnn, b_gnn, w1, b1, w2, b2):
    """Pad + cast the call-invariant tensors ONCE (A_hat is constant across
    forwards, so callers should cache this).  bf16 casts happen BEFORE padding
    so the pad pass over the N^2 adjacency touches half the bytes."""
    n = adj.shape[0]
    in_feats, n_hidden = w_gnn.shape
    d1 = w1.shape[1]
    n_classes = w2.shape[1]

    n_pad = _round_up(n, 128)
    f_in_pad = _round_up(in_feats, 128)
    h_pad = _round_up(n_hidden, 128)
    d1_pad = _round_up(d1, 128)
    c_pad = _round_up(n_classes, 128)

    return dict(
        n=n, n_pad=n_pad,
        in_feats=in_feats, f_in_pad=f_in_pad,
        n_hidden=n_hidden, h_pad=h_pad,
        n_classes=n_classes, c_pad=c_pad,
        adj=_pad2(adj.astype(jnp.bfloat16), n_pad, n_pad),
        wg=_pad2(w_gnn.astype(jnp.bfloat16), f_in_pad, h_pad),
        bg=_pad2(b_gnn.reshape(1, -1).astype(jnp.float32), 1, h_pad),
        w1=_pad2(w1.astype(jnp.bfloat16), h_pad, d1_pad),
        b1=_pad2(b1.reshape(1, -1).astype(jnp.float32), 1, d1_pad),
        w2=_pad2(w2.astype(jnp.bfloat16), d1_pad, c_pad),
        b2=_pad2(b2.reshape(1, -1).astype(jnp.float32), 1, c_pad),
    )


def linear_mlp_forward(params, feat, *, K):
    p = params
    feat_p = _pad2(feat.astype(jnp.bfloat16), p["n_pad"], p["f_in_pad"])

    # K == 0 degenerate SGC: no propagation, just projection + MLP head.
    if K == 0:
        out_p = _tiled_matmul_head(
            feat_p, p["wg"], None, p["bg"], p["w1"], p["b1"], p["w2"], p["b2"],
            tm=_pick_tile(p["n_pad"], 512, min_grid=2),
            tk=p["f_in_pad"], b_resident=False, apply_wg=False)
        return out_p[:p["n"], :p["n_classes"]]

    # Algebraic reorder: A^K (X Wg) == (A^K X) Wg.  If the projection shrinks
    # the feature dim, project first so the O(K*N^2*F) hops propagate the
    # narrower matrix (bias still added after propagation -> identical math).
    reorder = p["n_hidden"] < p["in_feats"]
    prop_f = p["h_pad"] if reorder else p["f_in_pad"]

    # Residency / tile plan (generation-aware): keep h fully VMEM-resident
    # during a hop when 2x (double-buffer worst case) its bf16 footprint fits
    # a third of the VMEM budget; otherwise stream it with a large row tile to
    # shrink the re-fetch factor.
    b_resident = 2 * p["n_pad"] * prop_f * 2 <= _VMEM_LIMIT_BYTES // 3
    tm = _pick_tile(p["n_pad"], 512 if b_resident else 1024, min_grid=2)
    tk = _pick_tile(p["n_pad"], 1024)

    if reorder:
        h = _tiled_matmul(feat_p, p["wg"], tm=tm, tk=p["f_in_pad"],
                          b_resident=False)
    else:
        h = feat_p

    for _ in range(K - 1):
        h = _tiled_matmul(p["adj"], h, tm=tm, tk=tk, b_resident=b_resident)

    out_p = _tiled_matmul_head(
        p["adj"], h, p["wg"], p["bg"], p["w1"], p["b1"], p["w2"], p["b2"],
        tm=tm, tk=tk, b_resident=b_resident, apply_wg=not reorder)
    return out_p[:p["n"], :p["n_classes"]]


# ---------------------------------------------------------------------------
# Pure-JAX reference and test harness.
# ---------------------------------------------------------------------------
def _reference_forward(adj, feat, w_gnn, b_gnn, w1, b1, w2, b2, *, K):
    h = feat
    for _ in range(K):
        h = adj @ h
    h = jnp.maximum(h @ w_gnn + b_gnn, 0.0)
    h = jnp.maximum(h @ w1 + b1, 0.0)
    return h @ w2 + b2


def _make_case(seed, n, in_feats, n_hidden, mlp_d0, n_classes):
    key = jax.random.PRNGKey(seed)
    k_feat, k_adj, k_wg, k_bg, k_w1, k_b1, k_w2, k_b2 = jax.random.split(key, 8)

    feat = jax.random.normal(k_feat, (n, in_feats), dtype=jnp.float32)

    # dense symmetrically-normalized adjacency A_hat = D^-1/2 (A + I) D^-1/2
    raw = (jax.random.uniform(k_adj, (n, n)) > 0.6).astype(jnp.float32)
    a = jnp.maximum(raw, raw.T) + jnp.eye(n, dtype=jnp.float32)
    dis = 1.0 / jnp.sqrt(a.sum(axis=1))
    adj = dis[:, None] * a * dis[None, :]

    w_gnn = jax.random.normal(k_wg, (in_feats, n_hidden), dtype=jnp.float32) * 0.1
    b_gnn = jax.random.normal(k_bg, (1, n_hidden), dtype=jnp.float32) * 0.1
    w1 = jax.random.normal(k_w1, (n_hidden, mlp_d0), dtype=jnp.float32) * 0.1
    b1 = jax.random.normal(k_b1, (1, mlp_d0), dtype=jnp.float32) * 0.1
    w2 = jax.random.normal(k_w2, (mlp_d0, n_classes), dtype=jnp.float32) * 0.1
    b2 = jax.random.normal(k_b2, (1, n_classes), dtype=jnp.float32) * 0.1
    return adj, feat, w_gnn, b_gnn, w1, b1, w2, b2


if __name__ == "__main__":
    # Case 1: module-consistent small shapes (in_feats < n_hidden -> propagate-
    # then-project; W_gnn applied inside the fused final-hop head).
    adj, feat, wg, bg, w1, b1, w2, b2 = _make_case(
        0, n=8, in_feats=16, n_hidden=32, mlp_d0=16, n_classes=4)
    params = prepare_linear_mlp_params(adj, wg, bg, w1, b1, w2, b2)
    out1 = jax.block_until_ready(linear_mlp_forward(params, feat, K=2))
    ref1 = _reference_forward(adj, feat, wg, bg, w1, b1, w2, b2, K=2)
    assert out1.shape == (8, 4)
    assert jnp.allclose(out1, ref1, atol=3e-2, rtol=3e-2), \
        float(jnp.max(jnp.abs(out1 - ref1)))

    # Case 2: n_hidden < in_feats exercises project-before-propagate, a
    # non-multiple-of-128 node count, and the VMEM-resident-h hop path.
    adj, feat, wg, bg, w1, b1, w2, b2 = _make_case(
        0, n=200, in_feats=64, n_hidden=16, mlp_d0=8, n_classes=3)
    params = prepare_linear_mlp_params(adj, wg, bg, w1, b1, w2, b2)
    out2 = jax.block_until_ready(linear_mlp_forward(params, feat, K=3))
    ref2 = _reference_forward(adj, feat, wg, bg, w1, b1, w2, b2, K=3)
    assert out2.shape == (200, 3)
    assert jnp.allclose(out2, ref2, atol=5e-2, rtol=5e-2), \
        float(jnp.max(jnp.abs(out2 - ref2)))

    # TODO(synk): BatchNorm1d / LayerNorm branches (norm='bn'/'ln') and train-mode
    # dropout are not implemented (module instantiated with norm=None, dropout=0, eval).
    print("KERNEL_OK")
</pallas_src>

<mosaic_0001>
module attributes {stable_mosaic.version = 11 : i64} {
  func.func @_hop_kernel(%arg0: i32, %arg1: i32, %arg2: memref<128x128xbf16, #tpu.memory_space<vmem>>, %arg3: memref<128x128xbf16, #tpu.memory_space<vmem>>, %arg4: memref<128x128xbf16, #tpu.memory_space<vmem>>, %arg5: memref<128x128xf32, #tpu.memory_space<vmem>>) attributes {dimension_semantics = [#tpu.dimension_semantics<parallel>, #tpu.dimension_semantics<arbitrary>], iteration_bounds = array<i64: 1, 1>, scalar_prefetch = 0 : i64, scratch_operands = 1 : i64, tpu.core_type = #tpu.core_type<tc>, window_params = [{transform_indices = @transform_0, window_bounds = array<i64: 128, 128>}, {pipeline_mode = #tpu.pipeline_mode<synchronous>, transform_indices = @transform_1, window_bounds = array<i64: 128, 128>}, {transform_indices = @transform_2, window_bounds = array<i64: 128, 128>}]} {
    %c0_i32 = arith.constant 0 : i32
    %0 = arith.cmpi eq, %arg1, %c0_i32 : i32
    %1 = arith.extui %0 : i1 to i32
    %c0_i32_0 = arith.constant 0 : i32
    %2 = arith.cmpi ne, %1, %c0_i32_0 : i32
    scf.if %2 {
      %cst_9 = arith.constant 0.000000e+00 : f32
      %15 = vector.broadcast %cst_9 : f32 to vector<128x128xf32>
      %c0_10 = arith.constant 0 : index
      %c0_11 = arith.constant 0 : index
      %16 = vector.load %arg5[%c0_10, %c0_11] : memref<128x128xf32, #tpu.memory_space<vmem>>, vector<128x128xf32>
      tpu.vector_store %arg5[%c0_10, %c0_11], %15 {strides = array<i32>} : memref<128x128xf32, #tpu.memory_space<vmem>>, vector<128x128xf32>,
    } else {
    }
    %c128_i32 = arith.constant 128 : i32
    %3 = arith.muli %arg1, %c128_i32 : i32
    %4 = tpu.assume_multiple %3, 128 : i32
    %5 = arith.index_cast %4 : i32 to index
    %c0 = arith.constant 0 : index
    %6 = vector.load %arg3[%5, %c0] : memref<128x128xbf16, #tpu.memory_space<vmem>>, vector<128x128xbf16>
    %c0_1 = arith.constant 0 : index
    %c0_2 = arith.constant 0 : index
    %7 = vector.load %arg5[%c0_1, %c0_2] : memref<128x128xf32, #tpu.memory_space<vmem>>, vector<128x128xf32>
    %c0_3 = arith.constant 0 : index
    %c0_4 = arith.constant 0 : index
    %8 = vector.load %arg2[%c0_3, %c0_4] : memref<128x128xbf16, #tpu.memory_space<vmem>>, vector<128x128xbf16>
    %cst = arith.constant dense<0.000000e+00> : vector<128x128xf32>
    %9 = tpu.matmul %8, %6, %cst {dimension_numbers = #tpu.dot_dimension_numbers<[1], [0], [0], [1], [0, 0, 1, 1], [], []>} : vector<128x128xbf16>, vector<128x128xbf16>, vector<128x128xf32> -> vector<128x128xf32>
    %10 = arith.addf %7, %9 : vector<128x128xf32>
    %c0_5 = arith.constant 0 : index
    %c0_6 = arith.constant 0 : index
    %11 = vector.load %arg5[%c0_5, %c0_6] : memref<128x128xf32, #tpu.memory_space<vmem>>, vector<128x128xf32>
    tpu.vector_store %arg5[%c0_5, %c0_6], %10 {strides = array<i32>} : memref<128x128xf32, #tpu.memory_space<vmem>>, vector<128x128xf32>,
    %c0_i32_7 = arith.constant 0 : i32
    %12 = arith.cmpi eq, %arg1, %c0_i32_7 : i32
    %13 = arith.extui %12 : i1 to i32
    %c0_i32_8 = arith.constant 0 : i32
    %14 = arith.cmpi ne, %13, %c0_i32_8 : i32
    scf.if %14 {
      %c0_9 = arith.constant 0 : index
      %c0_10 = arith.constant 0 : index
      %15 = vector.load %arg5[%c0_9, %c0_10] : memref<128x128xf32, #tpu.memory_space<vmem>>, vector<128x128xf32>
      %16 = arith.truncf %15 : vector<128x128xf32> to vector<128x128xbf16>
      %c0_11 = arith.constant 0 : index
      %c0_12 = arith.constant 0 : index
      %17 = vector.load %arg4[%c0_11, %c0_12] : memref<128x128xbf16, #tpu.memory_space<vmem>>, vector<128x128xbf16>
      tpu.vector_store %arg4[%c0_11, %c0_12], %16 {strides = array<i32>} : memref<128x128xbf16, #tpu.memory_space<vmem>>, vector<128x128xbf16>,
    } else {
    }
    return
  }
  func.func @transform_0(%arg0: i32, %arg1: i32) -> (i32, i32) {
    %c0_i32 = arith.constant 0 : i32
    return %arg0, %arg1 : i32, i32
  }
  func.func @transform_1(%arg0: i32, %arg1: i32) -> (i32, i32) {
    %c0_i32 = arith.constant 0 : i32
    %c0_i32_0 = arith.constant 0 : i32
    %c0_i32_1 = arith.constant 0 : i32
    return %c0_i32, %c0_i32_0 : i32, i32
  }
  func.func @transform_2(%arg0: i32, %arg1: i32) -> (i32, i32) {
    %c0_i32 = arith.constant 0 : i32
    %c0_i32_0 = arith.constant 0 : i32
    return %arg0, %c0_i32 : i32, i32
  }
}

</mosaic_0001>

<bundles_post_ra>
// kernel: tpu_custom_call.1
= control target key start
LH: loop header
LB: loop body
LE: loop exit
PB: predicated region body
PF: predicated region fallthrough
CT: control target
= control target key end

     0   :  { %7 = vsyncpa [#allocation4], 0  ;;  %s775_s0 = inlined_call_operand.hbm [shape: bf16[128,128], index: 0, kind: input, shape index: {}]   ;;  %s776_s1 = inlined_call_operand.hbm [shape: bf16[128,128], index: 1, kind: input, shape index: {}]   ;;  %s777_s2 = inlined_call_operand.hbm [shape: bf16[128,128], index: 2, kind: output, shape index: {}]  }
   0x1   :  { %8 = vsyncpa [#allocation7], 0 }
   0x2   :  { %9 = vsyncpa [#allocation5], 0  ;;  %s710_s9 = smov [#allocation3]   ;;  %s638_s13 = scalar_lea.hbm %s775_s0, 1024 }
   0x3   :  { %s15_s10 = sshll.u32 %s710_s9, 4  ;;  %p639_p0 = scmp.ne.s32.totalorder %s775_s0, %s638_s13  ;;  %s16_s10 = int_to_ptr.vmem [resolvable:$true] %s15_s10 }
   0x4   :  { %p642_p1 = scmp.lt.u32.totalorder %s638_s13, %s775_s0 }
   0x6   :  { %p644_p2 = pnand %p642_p1, %p639_p0 }
   0x8   :  { %647 = shalt.err (!%p644_p2)
}
   0x9   :  { %s648_s18 = scalar_lea.vmem %s16_s10, 1024  ;;  %p653_p4 = scmp.lt.s32.totalorder %s16_s10, %s16_s10 }
   0xa   :  { %p649_p3 = scmp.ne.s32.totalorder %s16_s10, %s648_s18  ;;  %p654_p5 = scmp.lt.s32.totalorder %s648_s18, %s648_s18 }
   0xc   :  { %p655_p6 = por %p654_p5, %p653_p4 }
   0xe   :  { %p656_p7 = pnand %p655_p6, %p649_p3 }
  0x10   :  { %659 = shalt.err (!%p656_p7)
}
  0x11   :  { %s711_s19 = smov 64   ;;  %s712_s20 = smov 4  }
  0x12   :  { %21 = dma.hbm_to_vmem [thread:$0]  %s775_s0, 1024, %s16_s10, [#allocation4], %s711_s19, %s711_s19, %s712_s20  }
  0x13   :  { %s713_s23 = smov [#allocation6]   ;;  %s660_s27 = scalar_lea.hbm %s776_s1, 1024 }
  0x14   :  { %s27_s24 = sshll.u32 %s713_s23, 4  ;;  %p661_p8 = scmp.ne.s32.totalorder %s776_s1, %s660_s27  ;;  %s28_s24 = int_to_ptr.vmem [resolvable:$true] %s27_s24 }
  0x15   :  { %p664_p9 = scmp.lt.u32.totalorder %s660_s27, %s776_s1 }
  0x17   :  { %p666_p10 = pnand %p664_p9, %p661_p8 }
  0x19   :  { %669 = shalt.err (!%p666_p10)
}
  0x1a   :  { %s670_s4 = scalar_lea.vmem %s28_s24, 1024  ;;  %p675_p12 = scmp.lt.s32.totalorder %s28_s24, %s28_s24 }
  0x1b   :  { %p671_p11 = scmp.ne.s32.totalorder %s28_s24, %s670_s4  ;;  %p676_p13 = scmp.lt.s32.totalorder %s670_s4, %s670_s4 }
  0x1d   :  { %p677_p0 = por %p676_p13, %p675_p12 }
  0x1f   :  { %p678_p1 = pnand %p677_p0, %p671_p11 }
  0x21   :  { %681 = shalt.err (!%p678_p1)
}
  0x22   :  { %33 = dma.hbm_to_vmem [thread:$0]  %s776_s1, 1024, %s28_s24, [#allocation7], %s711_s19, %s711_s19, %s712_s20  }
  0x23   :  { %704 = dma.done.wait [#allocation4], 1024  }
  0x24   :  { %705 = vsyncadd [#allocation4], 4294966272 }
  0x25   :  { %706 = dma.done.wait [#allocation7], 1024  }
  0x26   :  { %707 = vsyncadd [#allocation7], 4294966272  ;;  %v622_v0 = vld [vmem:[#allocation6] sm:$0xff]   ;;  %v623_v1 = vld [vmem:[#allocation6 + $0x8] sm:$0xff]   ;;  %s714_s1 = smov [#allocation8]  }
  0x27   :  { %569 = vmatprep.subr.bf16.mxu0 %v622_v0  ;;  %601 = vmatprep.subr.bf16.mxu1 %v622_v0  ;;  %v624_v2 = vld [vmem:[#allocation6 + $0x10] sm:$0xff]   ;;  %v625_v3 = vld [vmem:[#allocation6 + $0x18] sm:$0xff]   ;;  %v630_v4 = vld [vmem:[#allocation3] sm:$0xff]   ;;  %s443_s6 = sshll.u32 %s714_s1, 4  ;;  %s444_s6 = int_to_ptr.vmem [resolvable:$true] %s443_s6 }
  0x28   :  { %570 = vmatpush3.bf16.msra.mxu0 %v622_v0  ;;  %609 = vmatpush3.bf16.msra.mxu1 %v622_v0  ;;  %v631_v5 = vld [vmem:[#allocation3 + $0x20] sm:$0xff]   ;;  %v627_v7 = vld [vmem:[#allocation6 + $0x28] sm:$0xff]   ;;  %v628_v8 = vld [vmem:[#allocation6 + $0x30] sm:$0xff]   ;;  %s682_s7 = scalar_lea.vmem %s444_s6, 1024  ;;  %p687_p3 = scmp.lt.s32.totalorder %s444_s6, %s444_s6 }
  0x29   :  { %571 = vmatprep.subr.bf16.mxu0 %v623_v1  ;;  %602 = vmatprep.subr.bf16.mxu1 %v623_v1  ;;  %v626_v6 = vld [vmem:[#allocation6 + $0x20] sm:$0xff]   ;;  %v629_v9 = vld [vmem:[#allocation6 + $0x38] sm:$0xff]   ;;  %v632_v10 = vld [vmem:[#allocation3 + $0x8] sm:$0xff]   ;;  %p683_p2 = scmp.ne.s32.totalorder %s444_s6, %s682_s7  ;;  %p688_p4 = scmp.lt.s32.totalorder %s682_s7, %s682_s7 }
  0x2a   :  { %585 = vmatprep.mubr.bf16.mxu0 %v630_v4  ;;  %593 = vmatprep.mubr.bf16.mxu1 %v631_v5  ;;  %v633_v11 = vld [vmem:[#allocation3 + $0x28] sm:$0xff]   ;;  %v634_v12 = vld [vmem:[#allocation3 + $0x10] sm:$0xff]   ;;  %v636_v14 = vld [vmem:[#allocation3 + $0x18] sm:$0xff]  }
  0x2b   :  { %v635_v13 = vld [vmem:[#allocation3 + $0x30] sm:$0xff]   ;;  %v637_v15 = vld [vmem:[#allocation3 + $0x38] sm:$0xff]   ;;  %p689_p5 = por %p688_p4, %p687_p3 }
  0x2c   :  { %572 = vmatpush3.bf16.msra.mxu0 %v623_v1  ;;  %610 = vmatpush3.bf16.msra.mxu1 %v623_v1 }
  0x2d   :  { %573 = vmatprep.subr.bf16.mxu0 %v624_v2  ;;  %603 = vmatprep.subr.bf16.mxu1 %v624_v2  ;;  %p690_p6 = pnand %p689_p5, %p683_p2 }
  0x30   :  { %574 = vmatpush3.bf16.msra.mxu0 %v624_v2  ;;  %611 = vmatpush3.bf16.msra.mxu1 %v624_v2 }
  0x31   :  { %575 = vmatprep.subr.bf16.mxu0 %v625_v3  ;;  %604 = vmatprep.subr.bf16.mxu1 %v625_v3 }
  0x34   :  { %576 = vmatpush3.bf16.msra.mxu0 %v625_v3  ;;  %612 = vmatpush3.bf16.msra.mxu1 %v625_v3 }
  0x35   :  { %577 = vmatprep.subr.bf16.mxu0 %v626_v6  ;;  %605 = vmatprep.subr.bf16.mxu1 %v626_v6 }
  0x38   :  { %578 = vmatpush3.bf16.msra.mxu0 %v626_v6  ;;  %613 = vmatpush3.bf16.msra.mxu1 %v626_v6 }
  0x39   :  { %579 = vmatprep.subr.bf16.mxu0 %v627_v7  ;;  %606 = vmatprep.subr.bf16.mxu1 %v627_v7 }
  0x3c   :  { %580 = vmatpush3.bf16.msra.mxu0 %v627_v7  ;;  %614 = vmatpush3.bf16.msra.mxu1 %v627_v7 }
  0x3d   :  { %581 = vmatprep.subr.bf16.mxu0 %v628_v8  ;;  %607 = vmatprep.subr.bf16.mxu1 %v628_v8 }
  0x40   :  { %582 = vmatpush3.bf16.msra.mxu0 %v628_v8  ;;  %615 = vmatpush3.bf16.msra.mxu1 %v628_v8 }
  0x41   :  { %583 = vmatprep.subr.bf16.mxu0 %v629_v9  ;;  %608 = vmatprep.subr.bf16.mxu1 %v629_v9 }
  0x44   :  { %584 = vmatpush3.bf16.msra.mxu0 %v629_v9  ;;  %616 = vmatpush3.bf16.msra.mxu1 %v629_v9 }
  0x47   :  { %586 = vmatmul.mubr.bf16.vlgmr.msra.gmra.mrb[0].mxu0 %v632_v10  ;;  %594 = vmatmul.mubr.bf16.vlgmr.msra.gmra.mrb[0].mxu1 %v633_v11 }
  0x48   :  { %589 = vmatprep.mubr.bf16.mxu0 %v634_v12  ;;  %597 = vmatprep.mubr.bf16.mxu1 %v635_v13 }
  0x4f   :  { %590 = vmatmul.mubr.bf16.gmra.mrb[4].mxu0 %v636_v14  ;;  %598 = vmatmul.mubr.bf16.gmra.mrb[4].mxu1 %v637_v15 }
 0x11a   :  { %v587_v16 = vpop.f32.mrb[0].mxu0  ;;  %v595_v17 = vpop.f32.mrb[0].mxu1 }
 0x11b   :  { %v244_v18 = vpop.f32.mrb[1].mxu0  ;;  %v276_v19 = vpop.f32.mrb[1].mxu1 }
 0x11c   :  { %v588_v20 = vpop.f32.mrb[2].mxu0  ;;  %v596_v21 = vpop.f32.mrb[2].mxu1 }
 0x11d   :  { %v514_v22 = vpack.c.bf16 %v588_v20, %v587_v16  ;;  %v534_v23 = vpack.c.bf16 %v596_v21, %v595_v17  ;;  %v247_v24 = vpop.f32.mrb[3].mxu0  ;;  %v279_v25 = vpop.f32.mrb[3].mxu1 }
 0x11e   :  { %v509_v26 = vpack.c.bf16 %v247_v24, %v244_v18  ;;  %v529_v27 = vpack.c.bf16 %v279_v25, %v276_v19 }
 0x11f   :  { %546 = vst [vmem:[#allocation8 + $0x8] sm:$0xff] %v514_v22   ;;  %550 = vst [vmem:[#allocation8 + $0x28] sm:$0xff] %v534_v23  }
 0x120   :  { %510 = vst [vmem:[#allocation8] sm:$0xff] %v509_v26   ;;  %549 = vst [vmem:[#allocation8 + $0x20] sm:$0xff] %v529_v27  }
 0x122   :  { %v591_v28 = vpop.f32.mrb[4].mxu0  ;;  %v599_v29 = vpop.f32.mrb[4].mxu1 }
 0x123   :  { %v260_v30 = vpop.f32.mrb[5].mxu0  ;;  %v292_v31 = vpop.f32.mrb[5].mxu1 }
 0x124   :  { %v592_v32 = vpop.f32.mrb[6].mxu0  ;;  %v600_v33 = vpop.f32.mrb[6].mxu1 }
 0x125   :  { %v524_v34 = vpack.c.bf16 %v592_v32, %v591_v28  ;;  %v544_v35 = vpack.c.bf16 %v600_v33, %v599_v29  ;;  %v263_v36 = vpop.f32.mrb[7].mxu0  ;;  %v295_v37 = vpop.f32.mrb[7].mxu1 }
 0x126   :  { %v519_v38 = vpack.c.bf16 %v263_v36, %v260_v30  ;;  %v539_v39 = vpack.c.bf16 %v295_v37, %v292_v31 }
 0x127   :  { %548 = vst [vmem:[#allocation8 + $0x18] sm:$0xff] %v524_v34   ;;  %552 = vst [vmem:[#allocation8 + $0x38] sm:$0xff] %v544_v35  }
 0x128   :  { %547 = vst [vmem:[#allocation8 + $0x10] sm:$0xff] %v519_v38   ;;  %551 = vst [vmem:[#allocation8 + $0x30] sm:$0xff] %v539_v39  }
 0x129   :  { %693 = shalt.err (!%p690_p6)
}
 0x12a   :  { %s694_s10 = scalar_lea.hbm %s777_s2, 1024 }
 0x12b   :  { %p695_p7 = scmp.ne.s32.totalorder %s777_s2, %s694_s10  ;;  %p698_p8 = scmp.lt.u32.totalorder %s694_s10, %s777_s2 }
 0x12d   :  { %p700_p9 = pnand %p698_p8, %p695_p7 }
 0x12f   :  { %703 = shalt.err (!%p700_p9)
}
 0x130   :  { %449 = dma.vmem_to_hbm [thread:$0]  %s444_s6, 1024, %s777_s2, [#allocation5], %s711_s19, %s711_s19, %s712_s20  }
 0x131   :  { %708 = dma.done.wait [#allocation5], 1024  }
 0x132   :  { %709 = vsyncadd [#allocation5], 4294966272 }
 0x133   :  { %453 = vsyncpa [#allocation4], 1 }
 0x134   :  { %454 = vsyncpa [#allocation7], 1 }
 0x135   :  { %455 = vsyncpa [#allocation5], 1 }

</bundles_post_ra>
